<compile_context>
chip_gen: v7x
topology: tpu7x:2x2x1
jax: 0.10.0
libtpu: 0.0.40
codegen_flags: <defaults>
</compile_context>

<pallas_src>
import functools

import jax
import jax.numpy as jnp
from jax.experimental import pallas as pl
from jax.experimental.pallas import tpu as pltpu


_IN_FEATURES = 29
_IN_PADDED = 32  # pad 29 -> 32 so the feature (sublane) dim is aligned


def _cdiv(a, b):
    return -(-a // b)


def _choose_tiling(B, max_tile_b):
    """Pick (TB, B_pad, n_tiles).

    - TB is a multiple of 128 (lane dim), capped at max_tile_b.
    - Padded waste is < one 128-row block per tile (review item #9).
    - If B spans >= 2 lane blocks but would fit a single tile, split into
      2 tiles so v7x's two TensorCores both run (review item #4).
    """
    blocks = _cdiv(max(B, 1), 128)
    max_blocks_per_tile = max(max_tile_b // 128, 1)
    n_tiles = _cdiv(blocks, max_blocks_per_tile)
    if n_tiles == 1 and blocks >= 2:
        n_tiles = 2
    blocks_per_tile = _cdiv(blocks, n_tiles)
    TB = blocks_per_tile * 128
    B_pad = n_tiles * TB
    return TB, B_pad, n_tiles


def _mlp_kernel(x_ref,
                w1_ref, b1_ref,
                w2_ref, b2_ref,
                w3_ref, b3_ref,
                w4_ref, b4_ref,
                w5_ref, b5_ref,
                w6_ref, b6_ref,
                out_ref):
    # Activations are feature-major: (features, TB). Batch lives on lanes.
    x = x_ref[...]                                          # (32, TB) bf16

    def layer(w_ref, b_ref, h_bf16, out_dtype):
        # MXU matmul with f32 accumulation; bias-add + tanh in f32; only the
        # `out_dtype` result is materialized (bf16 for layers 1-4).
        acc = jnp.dot(w_ref[...], h_bf16,
                      preferred_element_type=jnp.float32)
        # TODO(synk): on v6e/v7x a bf16 tanh (cast acc+b first) would ~2x EUP
        # throughput, but v5e has no bf16 EUP path; keep f32 tanh for
        # portability/accuracy.
        return jnp.tanh(acc + b_ref[...]).astype(out_dtype)

    h = layer(w1_ref, b1_ref, x, jnp.bfloat16)              # (128, TB) bf16
    h = layer(w2_ref, b2_ref, h, jnp.bfloat16)              # (64, TB) bf16
    h = layer(w3_ref, b3_ref, h, jnp.bfloat16)
    h = layer(w4_ref, b4_ref, h, jnp.bfloat16)
    h = layer(w5_ref, b5_ref, h, jnp.float32)                # f32 for reduce

    # Final 64 -> 1 layer: VPU multiply + sublane (XLU) reduction.
    # Result (1, TB) is lane-dense -> unmasked stores.
    y = jnp.sum(h * w6_ref[...], axis=0, keepdims=True) + b6_ref[...]
    out_ref[0] = jnp.tanh(y).astype(out_ref.dtype)           # out_ref: (1,1,TB)


def backgammon_nn_forward(x, params, *, max_tile_b=2048):
    """Forward pass. x: (B, 29) or (29,) float32 -> (B, 1) float32.

    params: list of 6 (W, b) pairs in PyTorch nn.Linear layout:
      W: (out_features, in_features), b: (out_features,).
    Intended to be called under jax.jit so the input pad/transpose/cast fuses.
    """
    if x.ndim == 1:
        x = x[None, :]
    x = x.astype(jnp.float32)
    B = x.shape[0]

    TB, B_pad, n_tiles = _choose_tiling(B, max_tile_b)

    # Pad features 29->32 and batch B->B_pad, transpose so batch is on lanes.
    # Under jit this pad -> transpose -> cast fuses into a single XLA pass.
    x_p = jnp.pad(x, ((0, B_pad - B), (0, _IN_PADDED - _IN_FEATURES)))
    x_t = x_p.T.astype(jnp.bfloat16)                         # (32, B_pad) bf16

    (w1, b1), (w2, b2), (w3, b3), (w4, b4), (w5, b5), (w6, b6) = params
    w1_p = jnp.pad(w1, ((0, 0), (0, _IN_PADDED - _IN_FEATURES)))

    flat = [
        w1_p.astype(jnp.bfloat16), b1[:, None].astype(jnp.float32),
        w2.astype(jnp.bfloat16),   b2[:, None].astype(jnp.float32),
        w3.astype(jnp.bfloat16),   b3[:, None].astype(jnp.float32),
        w4.astype(jnp.bfloat16),   b4[:, None].astype(jnp.float32),
        w5.astype(jnp.bfloat16),   b5[:, None].astype(jnp.float32),
        w6.T.astype(jnp.float32),  b6.reshape(1, 1).astype(jnp.float32),
    ]

    # Weights/biases: whole-array blocks, constant index map -> VMEM resident.
    def resident(a):
        nd = a.ndim
        return pl.BlockSpec(a.shape, lambda i, _nd=nd: (0,) * _nd)

    flops = 2 * B_pad * (_IN_PADDED * 128 + 128 * 64 + 3 * 64 * 64 + 64)
    transcendentals = B_pad * (128 + 4 * 64 + 1)
    weight_bytes = sum(int(a.size) * a.dtype.itemsize for a in flat)
    bytes_accessed = int(x_t.size) * 2 + B_pad * 4 + weight_bytes

    out = pl.pallas_call(
        _mlp_kernel,
        out_shape=jax.ShapeDtypeStruct((n_tiles, 1, TB), jnp.float32),
        grid=(n_tiles,),
        in_specs=[pl.BlockSpec((_IN_PADDED, TB), lambda i: (0, i))]
                 + [resident(a) for a in flat],
        out_specs=pl.BlockSpec((1, 1, TB), lambda i: (i, 0, 0)),
        compiler_params=pltpu.CompilerParams(
            dimension_semantics=("parallel",)),
        cost_estimate=pl.CostEstimate(
            flops=flops,
            transcendentals=transcendentals,
            bytes_accessed=bytes_accessed),
    )(x_t, *flat)

    return out.reshape(B_pad)[:B, None]


def init_params(key):
    """PyTorch nn.Linear default init: W (out, in), b (out,),
    uniform(-1/sqrt(fan_in), 1/sqrt(fan_in))."""
    dims = [(29, 128), (128, 64), (64, 64), (64, 64), (64, 64), (64, 1)]
    params = []
    for fan_in, fan_out in dims:
        key, kw, kb = jax.random.split(key, 3)
        bound = 1.0 / (fan_in ** 0.5)
        w = jax.random.uniform(kw, (fan_out, fan_in), jnp.float32,
                               minval=-bound, maxval=bound)
        b = jax.random.uniform(kb, (fan_out,), jnp.float32,
                               minval=-bound, maxval=bound)
        params.append((w, b))
    return params


def reference_forward(x, params):
    """Pure-JAX reference using the same bf16-operand / f32-accumulate scheme."""
    if x.ndim == 1:
        x = x[None, :]
    (w1, b1), (w2, b2), (w3, b3), (w4, b4), (w5, b5), (w6, b6) = params
    xp = jnp.pad(x.astype(jnp.float32),
                 ((0, 0), (0, _IN_PADDED - _IN_FEATURES)))
    w1p = jnp.pad(w1, ((0, 0), (0, _IN_PADDED - _IN_FEATURES)))

    def layer(h, w, b):
        acc = jnp.dot(h.astype(jnp.bfloat16), w.astype(jnp.bfloat16).T,
                      preferred_element_type=jnp.float32)
        return jnp.tanh(acc + b)

    h = layer(xp, w1p, b1)
    h = layer(h, w2, b2)
    h = layer(h, w3, b3)
    h = layer(h, w4, b4)
    h = layer(h, w5, b5)
    y = jnp.sum(h * w6[0].astype(jnp.float32), axis=-1, keepdims=True) + b6
    return jnp.tanh(y)


if __name__ == "__main__":
    key = jax.random.PRNGKey(0)
    key, kx = jax.random.split(key)

    B = 8
    x = jax.random.normal(kx, (B, 29), jnp.float32)
    params = init_params(key)

    fwd = jax.jit(functools.partial(backgammon_nn_forward, params=params))
    out = fwd(x)
    out = jax.block_until_ready(out)

    ref = reference_forward(x, params)
    assert out.shape == (B, 1), out.shape
    assert jnp.allclose(out, ref, atol=1e-4, rtol=1e-4), (
        "mismatch vs reference", out, ref)

    print("KERNEL_OK")
</pallas_src>

<mosaic_0001>
module attributes {stable_mosaic.version = 11 : i64} {
  func.func @_mlp_kernel(%arg0: i32, %arg1: memref<32x128xbf16, #tpu.memory_space<vmem>>, %arg2: memref<128x32xbf16, #tpu.memory_space<vmem>>, %arg3: memref<128x1xf32, #tpu.memory_space<vmem>>, %arg4: memref<64x128xbf16, #tpu.memory_space<vmem>>, %arg5: memref<64x1xf32, #tpu.memory_space<vmem>>, %arg6: memref<64x64xbf16, #tpu.memory_space<vmem>>, %arg7: memref<64x1xf32, #tpu.memory_space<vmem>>, %arg8: memref<64x64xbf16, #tpu.memory_space<vmem>>, %arg9: memref<64x1xf32, #tpu.memory_space<vmem>>, %arg10: memref<64x64xbf16, #tpu.memory_space<vmem>>, %arg11: memref<64x1xf32, #tpu.memory_space<vmem>>, %arg12: memref<64x1xf32, #tpu.memory_space<vmem>>, %arg13: memref<1x1xf32, #tpu.memory_space<vmem>>, %arg14: memref<1x1x128xf32, #tpu.memory_space<vmem>>) attributes {dimension_semantics = [#tpu.dimension_semantics<parallel>], iteration_bounds = array<i64: 1>, scalar_prefetch = 0 : i64, scratch_operands = 0 : i64, tpu.core_type = #tpu.core_type<tc>, window_params = [{transform_indices = @transform_0, window_bounds = array<i64: 32, 128>}, {pipeline_mode = #tpu.pipeline_mode<synchronous>, transform_indices = @transform_1, window_bounds = array<i64: 128, 32>}, {pipeline_mode = #tpu.pipeline_mode<synchronous>, transform_indices = @transform_2, window_bounds = array<i64: 128, 1>}, {pipeline_mode = #tpu.pipeline_mode<synchronous>, transform_indices = @transform_3, window_bounds = array<i64: 64, 128>}, {pipeline_mode = #tpu.pipeline_mode<synchronous>, transform_indices = @transform_4, window_bounds = array<i64: 64, 1>}, {pipeline_mode = #tpu.pipeline_mode<synchronous>, transform_indices = @transform_5, window_bounds = array<i64: 64, 64>}, {pipeline_mode = #tpu.pipeline_mode<synchronous>, transform_indices = @transform_6, window_bounds = array<i64: 64, 1>}, {pipeline_mode = #tpu.pipeline_mode<synchronous>, transform_indices = @transform_7, window_bounds = array<i64: 64, 64>}, {pipeline_mode = #tpu.pipeline_mode<synchronous>, transform_indices = @transform_8, window_bounds = array<i64: 64, 1>}, {pipeline_mode = #tpu.pipeline_mode<synchronous>, transform_indices = @transform_9, window_bounds = array<i64: 64, 64>}, {pipeline_mode = #tpu.pipeline_mode<synchronous>, transform_indices = @transform_10, window_bounds = array<i64: 64, 1>}, {pipeline_mode = #tpu.pipeline_mode<synchronous>, transform_indices = @transform_11, window_bounds = array<i64: 64, 1>}, {pipeline_mode = #tpu.pipeline_mode<synchronous>, transform_indices = @transform_12, window_bounds = array<i64: 1, 1>}, {transform_indices = @transform_13, window_bounds = array<i64: 1, 1, 128>}]} {
    %c0 = arith.constant 0 : index
    %c0_0 = arith.constant 0 : index
    %0 = vector.load %arg1[%c0, %c0_0] : memref<32x128xbf16, #tpu.memory_space<vmem>>, vector<32x128xbf16>
    %c0_1 = arith.constant 0 : index
    %c0_2 = arith.constant 0 : index
    %1 = vector.load %arg2[%c0_1, %c0_2] : memref<128x32xbf16, #tpu.memory_space<vmem>>, vector<128x32xbf16>
    %cst = arith.constant dense<0.000000e+00> : vector<128x128xf32>
    %2 = tpu.matmul %1, %0, %cst {dimension_numbers = #tpu.dot_dimension_numbers<[1], [0], [0], [1], [0, 0, 1, 1], [], []>} : vector<128x32xbf16>, vector<32x128xbf16>, vector<128x128xf32> -> vector<128x128xf32>
    %c0_3 = arith.constant 0 : index
    %c0_4 = arith.constant 0 : index
    %3 = vector.load %arg3[%c0_3, %c0_4] : memref<128x1xf32, #tpu.memory_space<vmem>>, vector<128x1xf32>
    %4 = vector.broadcast %3 : vector<128x1xf32> to vector<128x128xf32>
    %5 = arith.addf %2, %4 : vector<128x128xf32>
    %6 = math.tanh %5 : vector<128x128xf32>
    %7 = arith.truncf %6 : vector<128x128xf32> to vector<128x128xbf16>
    %c0_5 = arith.constant 0 : index
    %c0_6 = arith.constant 0 : index
    %8 = vector.load %arg4[%c0_5, %c0_6] : memref<64x128xbf16, #tpu.memory_space<vmem>>, vector<64x128xbf16>
    %cst_7 = arith.constant dense<0.000000e+00> : vector<64x128xf32>
    %9 = tpu.matmul %8, %7, %cst_7 {dimension_numbers = #tpu.dot_dimension_numbers<[1], [0], [0], [1], [0, 0, 1, 1], [], []>} : vector<64x128xbf16>, vector<128x128xbf16>, vector<64x128xf32> -> vector<64x128xf32>
    %c0_8 = arith.constant 0 : index
    %c0_9 = arith.constant 0 : index
    %10 = vector.load %arg5[%c0_8, %c0_9] : memref<64x1xf32, #tpu.memory_space<vmem>>, vector<64x1xf32>
    %11 = vector.broadcast %10 : vector<64x1xf32> to vector<64x128xf32>
    %12 = arith.addf %9, %11 : vector<64x128xf32>
    %13 = math.tanh %12 : vector<64x128xf32>
    %14 = arith.truncf %13 : vector<64x128xf32> to vector<64x128xbf16>
    %c0_10 = arith.constant 0 : index
    %c0_11 = arith.constant 0 : index
    %15 = vector.load %arg6[%c0_10, %c0_11] : memref<64x64xbf16, #tpu.memory_space<vmem>>, vector<64x64xbf16>
    %cst_12 = arith.constant dense<0.000000e+00> : vector<64x128xf32>
    %16 = tpu.matmul %15, %14, %cst_12 {dimension_numbers = #tpu.dot_dimension_numbers<[1], [0], [0], [1], [0, 0, 1, 1], [], []>} : vector<64x64xbf16>, vector<64x128xbf16>, vector<64x128xf32> -> vector<64x128xf32>
    %c0_13 = arith.constant 0 : index
    %c0_14 = arith.constant 0 : index
    %17 = vector.load %arg7[%c0_13, %c0_14] : memref<64x1xf32, #tpu.memory_space<vmem>>, vector<64x1xf32>
    %18 = vector.broadcast %17 : vector<64x1xf32> to vector<64x128xf32>
    %19 = arith.addf %16, %18 : vector<64x128xf32>
    %20 = math.tanh %19 : vector<64x128xf32>
    %21 = arith.truncf %20 : vector<64x128xf32> to vector<64x128xbf16>
    %c0_15 = arith.constant 0 : index
    %c0_16 = arith.constant 0 : index
    %22 = vector.load %arg8[%c0_15, %c0_16] : memref<64x64xbf16, #tpu.memory_space<vmem>>, vector<64x64xbf16>
    %cst_17 = arith.constant dense<0.000000e+00> : vector<64x128xf32>
    %23 = tpu.matmul %22, %21, %cst_17 {dimension_numbers = #tpu.dot_dimension_numbers<[1], [0], [0], [1], [0, 0, 1, 1], [], []>} : vector<64x64xbf16>, vector<64x128xbf16>, vector<64x128xf32> -> vector<64x128xf32>
    %c0_18 = arith.constant 0 : index
    %c0_19 = arith.constant 0 : index
    %24 = vector.load %arg9[%c0_18, %c0_19] : memref<64x1xf32, #tpu.memory_space<vmem>>, vector<64x1xf32>
    %25 = vector.broadcast %24 : vector<64x1xf32> to vector<64x128xf32>
    %26 = arith.addf %23, %25 : vector<64x128xf32>
    %27 = math.tanh %26 : vector<64x128xf32>
    %28 = arith.truncf %27 : vector<64x128xf32> to vector<64x128xbf16>
    %c0_20 = arith.constant 0 : index
    %c0_21 = arith.constant 0 : index
    %29 = vector.load %arg10[%c0_20, %c0_21] : memref<64x64xbf16, #tpu.memory_space<vmem>>, vector<64x64xbf16>
    %cst_22 = arith.constant dense<0.000000e+00> : vector<64x128xf32>
    %30 = tpu.matmul %29, %28, %cst_22 {dimension_numbers = #tpu.dot_dimension_numbers<[1], [0], [0], [1], [0, 0, 1, 1], [], []>} : vector<64x64xbf16>, vector<64x128xbf16>, vector<64x128xf32> -> vector<64x128xf32>
    %c0_23 = arith.constant 0 : index
    %c0_24 = arith.constant 0 : index
    %31 = vector.load %arg11[%c0_23, %c0_24] : memref<64x1xf32, #tpu.memory_space<vmem>>, vector<64x1xf32>
    %32 = vector.broadcast %31 : vector<64x1xf32> to vector<64x128xf32>
    %33 = arith.addf %30, %32 : vector<64x128xf32>
    %34 = math.tanh %33 : vector<64x128xf32>
    %c0_25 = arith.constant 0 : index
    %c0_26 = arith.constant 0 : index
    %35 = vector.load %arg12[%c0_25, %c0_26] : memref<64x1xf32, #tpu.memory_space<vmem>>, vector<64x1xf32>
    %36 = vector.broadcast %35 : vector<64x1xf32> to vector<64x128xf32>
    %37 = arith.mulf %34, %36 : vector<64x128xf32>
    %cst_27 = arith.constant dense<0.000000e+00> : vector<128xf32>
    %38 = vector.multi_reduction <add>, %37, %cst_27 [0] : vector<64x128xf32> to vector<128xf32>
    %39 = vector.shape_cast %38 : vector<128xf32> to vector<1x128xf32>
    %c0_28 = arith.constant 0 : index
    %c0_29 = arith.constant 0 : index
    %40 = vector.load %arg13[%c0_28, %c0_29] : memref<1x1xf32, #tpu.memory_space<vmem>>, vector<1x1xf32>
    %41 = vector.broadcast %40 : vector<1x1xf32> to vector<1x128xf32>
    %42 = arith.addf %39, %41 : vector<1x128xf32>
    %43 = math.tanh %42 : vector<1x128xf32>
    %c0_30 = arith.constant 0 : index
    %c0_31 = arith.constant 0 : index
    %c0_32 = arith.constant 0 : index
    %44 = vector.load %arg14[%c0_30, %c0_31, %c0_32] : memref<1x1x128xf32, #tpu.memory_space<vmem>>, vector<1x1x128xf32>
    %45 = vector.shape_cast %44 : vector<1x1x128xf32> to vector<1x128xf32>
    %46 = vector.shape_cast %43 : vector<1x128xf32> to vector<1x1x128xf32>
    tpu.vector_store %arg14[%c0_30, %c0_31, %c0_32], %46 {strides = array<i32>} : memref<1x1x128xf32, #tpu.memory_space<vmem>>, vector<1x1x128xf32>,
    return
  }
  func.func @transform_0(%arg0: i32) -> (i32, i32) {
    %c0_i32 = arith.constant 0 : i32
    %c0_i32_0 = arith.constant 0 : i32
    return %c0_i32, %arg0 : i32, i32
  }
  func.func @transform_1(%arg0: i32) -> (i32, i32) {
    %c0_i32 = arith.constant 0 : i32
    %c0_i32_0 = arith.constant 0 : i32
    %c0_i32_1 = arith.constant 0 : i32
    return %c0_i32, %c0_i32_0 : i32, i32
  }
  func.func @transform_2(%arg0: i32) -> (i32, i32) {
    %c0_i32 = arith.constant 0 : i32
    %c0_i32_0 = arith.constant 0 : i32
    %c0_i32_1 = arith.constant 0 : i32
    return %c0_i32, %c0_i32_0 : i32, i32
  }
  func.func @transform_3(%arg0: i32) -> (i32, i32) {
    %c0_i32 = arith.constant 0 : i32
    %c0_i32_0 = arith.constant 0 : i32
    %c0_i32_1 = arith.constant 0 : i32
    return %c0_i32, %c0_i32_0 : i32, i32
  }
  func.func @transform_4(%arg0: i32) -> (i32, i32) {
    %c0_i32 = arith.constant 0 : i32
    %c0_i32_0 = arith.constant 0 : i32
    %c0_i32_1 = arith.constant 0 : i32
    return %c0_i32, %c0_i32_0 : i32, i32
  }
  func.func @transform_5(%arg0: i32) -> (i32, i32) {
    %c0_i32 = arith.constant 0 : i32
    %c0_i32_0 = arith.constant 0 : i32
    %c0_i32_1 = arith.constant 0 : i32
    return %c0_i32, %c0_i32_0 : i32, i32
  }
  func.func @transform_6(%arg0: i32) -> (i32, i32) {
    %c0_i32 = arith.constant 0 : i32
    %c0_i32_0 = arith.constant 0 : i32
    %c0_i32_1 = arith.constant 0 : i32
    return %c0_i32, %c0_i32_0 : i32, i32
  }
  func.func @transform_7(%arg0: i32) -> (i32, i32) {
    %c0_i32 = arith.constant 0 : i32
    %c0_i32_0 = arith.constant 0 : i32
    %c0_i32_1 = arith.constant 0 : i32
    return %c0_i32, %c0_i32_0 : i32, i32
  }
  func.func @transform_8(%arg0: i32) -> (i32, i32) {
    %c0_i32 = arith.constant 0 : i32
    %c0_i32_0 = arith.constant 0 : i32
    %c0_i32_1 = arith.constant 0 : i32
    return %c0_i32, %c0_i32_0 : i32, i32
  }
  func.func @transform_9(%arg0: i32) -> (i32, i32) {
    %c0_i32 = arith.constant 0 : i32
    %c0_i32_0 = arith.constant 0 : i32
    %c0_i32_1 = arith.constant 0 : i32
    return %c0_i32, %c0_i32_0 : i32, i32
  }
  func.func @transform_10(%arg0: i32) -> (i32, i32) {
    %c0_i32 = arith.constant 0 : i32
    %c0_i32_0 = arith.constant 0 : i32
    %c0_i32_1 = arith.constant 0 : i32
    return %c0_i32, %c0_i32_0 : i32, i32
  }
  func.func @transform_11(%arg0: i32) -> (i32, i32) {
    %c0_i32 = arith.constant 0 : i32
    %c0_i32_0 = arith.constant 0 : i32
    %c0_i32_1 = arith.constant 0 : i32
    return %c0_i32, %c0_i32_0 : i32, i32
  }
  func.func @transform_12(%arg0: i32) -> (i32, i32) {
    %c0_i32 = arith.constant 0 : i32
    %c0_i32_0 = arith.constant 0 : i32
    %c0_i32_1 = arith.constant 0 : i32
    return %c0_i32, %c0_i32_0 : i32, i32
  }
  func.func @transform_13(%arg0: i32) -> (i32, i32, i32) {
    %c0_i32 = arith.constant 0 : i32
    %c0_i32_0 = arith.constant 0 : i32
    %c0_i32_1 = arith.constant 0 : i32
    return %arg0, %c0_i32, %c0_i32_0 : i32, i32, i32
  }
}

</mosaic_0001>

<bundles_post_ra>
// kernel: backgammon_nn_forward.1
= control target key start
LH: loop header
LB: loop body
LE: loop exit
PB: predicated region body
PF: predicated region fallthrough
CT: control target
= control target key end

     0   :  { %s2054_s0 = inlined_call_operand.vmem [shape: bf16[32,128], index: 0, kind: input, shape index: {}]   ;;  %s2055_s1 = inlined_call_operand.vmem [shape: bf16[128,32], index: 1, kind: input, shape index: {}]   ;;  %s2056_s2 = inlined_call_operand.hbm [shape: f32[128,1], index: 2, kind: input, shape index: {}]   ;;  %s2057_s3 = inlined_call_operand.hbm [shape: bf16[64,128], index: 3, kind: input, shape index: {}]   ;;  %s2058_s4 = inlined_call_operand.vmem [shape: f32[64,1], index: 4, kind: input, shape index: {}]   ;;  %s2059_s5 = inlined_call_operand.hbm [shape: bf16[64,64], index: 5, kind: input, shape index: {}]   ;;  %s2060_s6 = inlined_call_operand.hbm [shape: f32[64,1], index: 6, kind: input, shape index: {}]   ;;  %s2061_s7 = inlined_call_operand.hbm [shape: bf16[64,64], index: 7, kind: input, shape index: {}]   ;;  %s2062_s8 = inlined_call_operand.hbm [shape: f32[64,1], index: 8, kind: input, shape index: {}]   ;;  %s2063_s9 = inlined_call_operand.hbm [shape: bf16[64,64], index: 9, kind: input, shape index: {}]   ;;  %s2064_s10 = inlined_call_operand.hbm [shape: f32[64,1], index: 10, kind: input, shape index: {}]   ;;  %s2065_s11 = inlined_call_operand.hbm [shape: f32[64,1], index: 11, kind: input, shape index: {}]   ;;  %s2066_s12 = inlined_call_operand.<no memory space> [shape: f32[1,1], index: 12, kind: input, shape index: {}]   ;;  %s2067_s13 = inlined_call_operand.vmem [shape: f32[1,1,128], index: 13, kind: output, shape index: {}]  }
   0x1   :  { %v18_v0 = vstv %s2066_s12 }
   0x2   :  { %19 = vst [vmem:[#allocation2] sm:$0x1] %v18_v0 }
   0x3   :  { %20 = vsyncpa [#allocation4], 0 }
   0x4   :  { %21 = vsyncpa [#allocation6], 0 }
   0x5   :  { %22 = vsyncpa [#allocation9], 0 }
   0x6   :  { %23 = vsyncpa [#allocation12], 0 }
   0x7   :  { %24 = vsyncpa [#allocation15], 0  ;;  %s1755_s27 = smov [#allocation5]   ;;  %s1547_s14 = scalar_lea.hbm %s2057_s3, 512 }
   0x8   :  { %s46_s28 = sshll.u32 %s1755_s27, 4  ;;  %p1548_p0 = scmp.ne.s32.totalorder %s2057_s3, %s1547_s14  ;;  %s47_s28 = int_to_ptr.vmem [resolvable:$true] %s46_s28 }
   0x9   :  { %p1551_p1 = scmp.lt.u32.totalorder %s1547_s14, %s2057_s3 }
   0xb   :  { %p1553_p2 = pnand %p1551_p1, %p1548_p0 }
   0xd   :  { %1556 = shalt.err (!%p1553_p2)
}
   0xe   :  { %s1557_s12 = scalar_lea.vmem %s47_s28, 512  ;;  %p1562_p4 = scmp.lt.s32.totalorder %s47_s28, %s47_s28 }
   0xf   :  { %p1558_p3 = scmp.ne.s32.totalorder %s47_s28, %s1557_s12  ;;  %p1563_p5 = scmp.lt.s32.totalorder %s1557_s12, %s1557_s12 }
  0x11   :  { %p1564_p6 = por %p1563_p5, %p1562_p4 }
  0x13   :  { %p1565_p7 = pnand %p1564_p6, %p1558_p3 }
  0x15   :  { %1568 = shalt.err (!%p1565_p7)
}
  0x16   :  { %s1756_s19 = smov 64   ;;  %s1757_s20 = smov 4  }
  0x17   :  { %52 = dma.hbm_to_vmem [thread:$0]  %s2057_s3, 512, %s47_s28, [#allocation6], %s1756_s19, %s1756_s19, %s1757_s20  }
  0x18   :  { %s1758_s23 = smov [#allocation8]   ;;  %s1759_s25 = smov [#allocation11]  }
  0x19   :  { %s72_s24 = sshll.u32 %s1758_s23, 4  ;;  %s96_s26 = sshll.u32 %s1759_s25, 4  ;;  %s73_s24 = int_to_ptr.vmem [resolvable:$true] %s72_s24  ;;  %s97_s26 = int_to_ptr.vmem [resolvable:$true] %s96_s26 }
  0x1a   :  { %s1569_s30 = scalar_lea.hbm %s2060_s6, 1024 }
  0x1b   :  { %p1570_p8 = scmp.ne.s32.totalorder %s2060_s6, %s1569_s30  ;;  %p1573_p9 = scmp.lt.u32.totalorder %s1569_s30, %s2060_s6 }
  0x1d   :  { %p1575_p10 = pnand %p1573_p9, %p1570_p8 }
  0x1f   :  { %1578 = shalt.err (!%p1575_p10)
}
  0x20   :  { %s1579_s3 = scalar_lea.vmem %s73_s24, 1024  ;;  %p1584_p12 = scmp.lt.s32.totalorder %s73_s24, %s73_s24 }
  0x21   :  { %p1580_p11 = scmp.ne.s32.totalorder %s73_s24, %s1579_s3  ;;  %p1585_p13 = scmp.lt.s32.totalorder %s1579_s3, %s1579_s3 }
  0x23   :  { %p1586_p0 = por %p1585_p13, %p1584_p12 }
  0x25   :  { %p1587_p1 = pnand %p1586_p0, %p1580_p11 }
  0x27   :  { %1590 = shalt.err (!%p1587_p1)
}
  0x28   :  { %s1760_s28 = smov 128   ;;  %s1761_s18 = smov 8  }
  0x29   :  { %78 = dma.hbm_to_vmem [thread:$0]  %s2060_s6, 1024, %s73_s24, [#allocation9], %s1760_s28, %s1760_s28, %s1761_s18  }
  0x2a   :  { %s1591_s25 = scalar_lea.hbm %s2062_s8, 1024 }
  0x2b   :  { %p1592_p2 = scmp.ne.s32.totalorder %s2062_s8, %s1591_s25  ;;  %p1595_p3 = scmp.lt.u32.totalorder %s1591_s25, %s2062_s8 }
  0x2d   :  { %p1597_p4 = pnand %p1595_p3, %p1592_p2 }
  0x2f   :  { %1600 = shalt.err (!%p1597_p4)
}
  0x30   :  { %s1601_s15 = scalar_lea.vmem %s97_s26, 1024  ;;  %p1606_p6 = scmp.lt.s32.totalorder %s97_s26, %s97_s26 }
  0x31   :  { %p1602_p5 = scmp.ne.s32.totalorder %s97_s26, %s1601_s15  ;;  %p1607_p7 = scmp.lt.s32.totalorder %s1601_s15, %s1601_s15 }
  0x33   :  { %p1608_p8 = por %p1607_p7, %p1606_p6 }
  0x35   :  { %p1609_p9 = pnand %p1608_p8, %p1602_p5 }
  0x37   :  { %1612 = shalt.err (!%p1609_p9)
}
  0x38   :  { %102 = dma.hbm_to_vmem [thread:$0]  %s2062_s8, 1024, %s97_s26, [#allocation12], %s1760_s28, %s1760_s28, %s1761_s18  }
  0x39   :  { %s1762_s16 = smov [#allocation14]   ;;  %s1763_s3 = smov [#allocation3]  }
  0x3a   :  { %s120_s17 = sshll.u32 %s1762_s16, 4  ;;  %s34_s12 = sshll.u32 %s1763_s3, 4  ;;  %s121_s17 = int_to_ptr.vmem [resolvable:$true] %s120_s17  ;;  %s35_s12 = int_to_ptr.vmem [resolvable:$true] %s34_s12 }
  0x3b   :  { %s1613_s23 = scalar_lea.hbm %s2064_s10, 1024 }
  0x3c   :  { %p1614_p10 = scmp.ne.s32.totalorder %s2064_s10, %s1613_s23  ;;  %p1617_p11 = scmp.lt.u32.totalorder %s1613_s23, %s2064_s10 }
  0x3e   :  { %p1619_p12 = pnand %p1617_p11, %p1614_p10 }
  0x40   :  { %1622 = shalt.err (!%p1619_p12)
}
  0x41   :  { %s1623_s8 = scalar_lea.vmem %s121_s17, 1024  ;;  %p1628_p0 = scmp.lt.s32.totalorder %s121_s17, %s121_s17 }
  0x42   :  { %p1624_p13 = scmp.ne.s32.totalorder %s121_s17, %s1623_s8  ;;  %p1629_p1 = scmp.lt.s32.totalorder %s1623_s8, %s1623_s8 }
  0x44   :  { %p1630_p2 = por %p1629_p1, %p1628_p0 }
  0x46   :  { %p1631_p3 = pnand %p1630_p2, %p1624_p13 }
  0x48   :  { %1634 = shalt.err (!%p1631_p3)
}
  0x49   :  { %126 = dma.hbm_to_vmem [thread:$0]  %s2064_s10, 1024, %s121_s17, [#allocation15], %s1760_s28, %s1760_s28, %s1761_s18  }
  0x4a   :  { %s1635_s24 = scalar_lea.hbm %s2056_s2, 2048 }
  0x4b   :  { %p1636_p4 = scmp.ne.s32.totalorder %s2056_s2, %s1635_s24  ;;  %p1639_p5 = scmp.lt.u32.totalorder %s1635_s24, %s2056_s2 }
  0x4d   :  { %p1641_p6 = pnand %p1639_p5, %p1636_p4 }
  0x4f   :  { %1644 = shalt.err (!%p1641_p6)
}
  0x50   :  { %s1645_s23 = scalar_lea.vmem %s35_s12, 2048  ;;  %p1650_p8 = scmp.lt.s32.totalorder %s35_s12, %s35_s12 }
  0x51   :  { %p1646_p7 = scmp.ne.s32.totalorder %s35_s12, %s1645_s23  ;;  %p1651_p9 = scmp.lt.s32.totalorder %s1645_s23, %s1645_s23 }
  0x53   :  { %p1652_p10 = por %p1651_p9, %p1650_p8 }
  0x55   :  { %p1653_p11 = pnand %p1652_p10, %p1646_p7 }
  0x57   :  { %1656 = shalt.err (!%p1653_p11)
}
  0x58   :  { %40 = dma.hbm_to_vmem [thread:$0]  %s2056_s2, 2048, %s35_s12, [#allocation4], %s1760_s28, %s1760_s28, %s1761_s18  }
  0x59   :  { %s1764_s25 = smov [#allocation7]   ;;  %s1765_s29 = smov [#allocation10]  }
  0x5a   :  { %s60_s27 = sshll.u32 %s1764_s25, 4  ;;  %s84_s30 = sshll.u32 %s1765_s29, 4  ;;  %s61_s27 = int_to_ptr.vmem [resolvable:$true] %s60_s27  ;;  %s85_s30 = int_to_ptr.vmem [resolvable:$true] %s84_s30 }
  0x5b   :  { %s1657_s14 = scalar_lea.hbm %s2059_s5, 512 }
  0x5c   :  { %p1658_p12 = scmp.ne.s32.totalorder %s2059_s5, %s1657_s14  ;;  %p1661_p13 = scmp.lt.u32.totalorder %s1657_s14, %s2059_s5 }
  0x5e   :  { %p1663_p0 = pnand %p1661_p13, %p1658_p12 }
  0x60   :  { %1666 = shalt.err (!%p1663_p0)
}
  0x61   :  { %s1667_s2 = scalar_lea.vmem %s61_s27, 512  ;;  %p1672_p2 = scmp.lt.s32.totalorder %s61_s27, %s61_s27 }
  0x62   :  { %p1668_p1 = scmp.ne.s32.totalorder %s61_s27, %s1667_s2  ;;  %p1673_p3 = scmp.lt.s32.totalorder %s1667_s2, %s1667_s2 }
  0x64   :  { %p1674_p4 = por %p1673_p3, %p1672_p2 }
  0x66   :  { %p1675_p5 = pnand %p1674_p4, %p1668_p1 }
  0x68   :  { %1678 = shalt.err (!%p1675_p5)
}
  0x69   :  { %66 = dma.hbm_to_vmem [thread:$0]  %s2059_s5, 512, %s61_s27, [#allocation6], %s1756_s19, %s1756_s19, %s1757_s20  }
  0x6a   :  { %s1679_s23 = scalar_lea.hbm %s2061_s7, 512 }
  0x6b   :  { %p1680_p6 = scmp.ne.s32.totalorder %s2061_s7, %s1679_s23  ;;  %p1683_p7 = scmp.lt.u32.totalorder %s1679_s23, %s2061_s7 }
  0x6d   :  { %p1685_p8 = pnand %p1683_p7, %p1680_p6 }
  0x6f   :  { %1688 = shalt.err (!%p1685_p8)
}
  0x70   :  { %s1689_s8 = scalar_lea.vmem %s85_s30, 512  ;;  %p1694_p10 = scmp.lt.s32.totalorder %s85_s30, %s85_s30 }
  0x71   :  { %p1690_p9 = scmp.ne.s32.totalorder %s85_s30, %s1689_s8  ;;  %p1695_p11 = scmp.lt.s32.totalorder %s1689_s8, %s1689_s8 }
  0x73   :  { %p1696_p12 = por %p1695_p11, %p1694_p10 }
  0x75   :  { %p1697_p13 = pnand %p1696_p12, %p1690_p9 }
  0x77   :  { %1700 = shalt.err (!%p1697_p13)
}
  0x78   :  { %90 = dma.hbm_to_vmem [thread:$0]  %s2061_s7, 512, %s85_s30, [#allocation9], %s1756_s19, %s1756_s19, %s1757_s20  }
  0x79   :  { %s1766_s26 = smov [#allocation13]   ;;  %s1767_s15 = smov [#allocation16]  }
  0x7a   :  { %s108_s14 = sshll.u32 %s1766_s26, 4  ;;  %s132_s6 = sshll.u32 %s1767_s15, 4  ;;  %s109_s14 = int_to_ptr.vmem [resolvable:$true] %s108_s14  ;;  %s133_s6 = int_to_ptr.vmem [resolvable:$true] %s132_s6 }
  0x7b   :  { %s1701_s2 = scalar_lea.hbm %s2063_s9, 512 }
  0x7c   :  { %p1702_p0 = scmp.ne.s32.totalorder %s2063_s9, %s1701_s2  ;;  %p1705_p1 = scmp.lt.u32.totalorder %s1701_s2, %s2063_s9 }
  0x7e   :  { %p1707_p2 = pnand %p1705_p1, %p1702_p0 }
  0x80   :  { %1710 = shalt.err (!%p1707_p2)
}
  0x81   :  { %s1711_s7 = scalar_lea.vmem %s109_s14, 512  ;;  %p1716_p4 = scmp.lt.s32.totalorder %s109_s14, %s109_s14 }
  0x82   :  { %p1712_p3 = scmp.ne.s32.totalorder %s109_s14, %s1711_s7  ;;  %p1717_p5 = scmp.lt.s32.totalorder %s1711_s7, %s1711_s7 }
  0x84   :  { %p1718_p6 = por %p1717_p5, %p1716_p4 }
  0x86   :  { %p1719_p7 = pnand %p1718_p6, %p1712_p3 }
  0x88   :  { %1722 = shalt.err (!%p1719_p7)
}
  0x89   :  { %114 = dma.hbm_to_vmem [thread:$0]  %s2063_s9, 512, %s109_s14, [#allocation12], %s1756_s19, %s1756_s19, %s1757_s20  }
  0x8a   :  { %s1723_s25 = scalar_lea.hbm %s2065_s11, 1024 }
  0x8b   :  { %p1724_p8 = scmp.ne.s32.totalorder %s2065_s11, %s1723_s25  ;;  %p1727_p9 = scmp.lt.u32.totalorder %s1723_s25, %s2065_s11 }
  0x8d   :  { %p1729_p10 = pnand %p1727_p9, %p1724_p8 }
  0x8f   :  { %1732 = shalt.err (!%p1729_p10)
}
  0x90   :  { %s1733_s26 = scalar_lea.vmem %s133_s6, 1024  ;;  %p1738_p12 = scmp.lt.s32.totalorder %s133_s6, %s133_s6 }
  0x91   :  { %p1734_p11 = scmp.ne.s32.totalorder %s133_s6, %s1733_s26  ;;  %p1739_p13 = scmp.lt.s32.totalorder %s1733_s26, %s1733_s26 }
  0x93   :  { %p1740_p0 = por %p1739_p13, %p1738_p12 }
  0x95   :  { %p1741_p1 = pnand %p1740_p0, %p1734_p11 }
  0x97   :  { %1744 = shalt.err (!%p1741_p1)
}
  0x98   :  { %138 = dma.hbm_to_vmem [thread:$0]  %s2065_s11, 1024, %s133_s6, [#allocation15], %s1760_s28, %s1760_s28, %s1761_s18  }
  0x99   :  { %1745 = dma.done.wait [#allocation4], 2048  }
  0x9a   :  { %1746 = vsyncadd [#allocation4], 4294965248 }
  0x9b   :  { %1747 = dma.done.wait [#allocation6], 1024  }
  0x9c   :  { %1748 = vsyncadd [#allocation6], 4294966272 }
  0x9d   :  { %1749 = dma.done.wait [#allocation9], 1536  }
  0x9e   :  { %1750 = vsyncadd [#allocation9], 4294965760 }
  0x9f   :  { %1751 = dma.done.wait [#allocation12], 1536  }
  0xa0   :  { %1752 = vsyncadd [#allocation12], 4294965760 }
  0xa1   :  { %1753 = dma.done.wait [#allocation15], 2048  }
  0xa2   :  { %1754 = vsyncadd [#allocation15], 4294965248  ;;  %v1768_v1 = vmov 0   ;;  %v191_v2 = vld [vmem:[#allocation3 + $0x10] sm:$0xff]  ;;  %v189_v3 = vld [vmem:[#allocation3] sm:$0xff]  ;;  %vm337_vm0 = vcmask 261120  }
  0xa3   :  { %1422 = vset.pattern.permute.xlu1 %v1768_v1  ;;  %1421 = vset.pattern.permute.xlu0 %v1768_v1  ;;  %v1423_v4 = vld [vmem:[%s2054_s0] sm:$0xff]   ;;  %v190_v6 = vld [vmem:[#allocation3 + $0x8] sm:$0xff]  ;;  %v195_v14 = vld [vmem:[#allocation3 + $0x30] sm:$0xff]  ;;  %vm716_vm1 = vcmask 523264  }
  0xa4   :  { %217 = vperm.xlu1 %1422, %v191_v2   ;;  %207 = vperm.xlu0 %1421, %v189_v3   ;;  %v192_v5 = vld [vmem:[#allocation3 + $0x18] sm:$0xff]  ;;  %v1424_v7 = vld [vmem:[%s2054_s0 + $0x8] sm:$0xff]   ;;  %v1427_v12 = vld [vmem:[%s2055_s1 + $0x10] sm:$0xff]  }
  0xa5   :  { %1315 = vmatprep.subr.bf16.mxu0 %v1423_v4  ;;  %v1425_v8 = vld [vmem:[%s2055_s1] sm:$0xff]   ;;  %v194_v9 = vld [vmem:[#allocation3 + $0x28] sm:$0xff]  ;;  %v1428_v17 = vld [vmem:[%s2055_s1 + $0x18] sm:$0xff]  }
  0xa6   :  { %1316 = vmatpush3.bf16.msra.mxu0 %v1423_v4  ;;  %v193_v10 = vld [vmem:[#allocation3 + $0x20] sm:$0xff]  ;;  %1319 = vmatprep.mubr.msk.bf16.mxu0 %vm337_vm0, %v1425_v8  ;;  %v196_v13 = vld [vmem:[#allocation3 + $0x38] sm:$0xff]  ;;  %v198_v15 = vld [vmem:[#allocation3 + $0x48] sm:$0xff] }
  0xa7   :  { %1317 = vmatprep.subr.bf16.mxu0 %v1424_v7  ;;  %v1426_v11 = vld [vmem:[%s2055_s1 + $0x8] sm:$0xff]   ;;  %v1429_v18 = vld [vmem:[%s2055_s1 + $0x20] sm:$0xff]   ;;  %v199_v20 = vld [vmem:[#allocation3 + $0x50] sm:$0xff] }
  0xa8   :  { %222 = vperm.xlu1 %1422, %v192_v5   ;;  %212 = vperm.xlu0 %1421, %v190_v6   ;;  %v197_v16 = vld [vmem:[#allocation3 + $0x40] sm:$0xff]  ;;  %v200_v19 = vld [vmem:[#allocation3 + $0x58] sm:$0xff]  ;;  %v202_v21 = vld [vmem:[#allocation3 + $0x68] sm:$0xff] }
  0xa9   :  { %v201_v22 = vld [vmem:[#allocation3 + $0x60] sm:$0xff]  ;;  %v1431_v24 = vld [vmem:[%s2055_s1 + $0x30] sm:$0xff]   ;;  %v204_v25 = vld [vmem:[#allocation3 + $0x78] sm:$0xff] }
  0xaa   :  { %1318 = vmatpush3.bf16.msra.mxu0 %v1424_v7  ;;  %v1430_v23 = vld [vmem:[%s2055_s1 + $0x28] sm:$0xff]   ;;  %v203_v26 = vld [vmem:[#allocation3 + $0x70] sm:$0xff]  ;;  %v491_v28 = vld [vmem:[%s2058_s4] sm:$0xff] }
  0xab   :  { %v492_v27 = vld [vmem:[%s2058_s4 + $0x8] sm:$0xff]  ;;  %v1432_v29 = vld [vmem:[%s2055_s1 + $0x38] sm:$0xff]   ;;  %v493_v31 = vld [vmem:[%s2058_s4 + $0x10] sm:$0xff] }
  0xac   :  { %232 = vperm.xlu1 %1422, %v194_v9   ;;  %227 = vperm.xlu0 %1421, %v193_v10   ;;  %v494_v30 = vld [vmem:[%s2058_s4 + $0x18] sm:$0xff]  ;;  %v496_v32 = vld [vmem:[%s2058_s4 + $0x28] sm:$0xff]  ;;  %v495_v33 = vld [vmem:[%s2058_s4 + $0x20] sm:$0xff] }
  0xad   :  { %1320 = vmatmul.mubr.msk.bf16.vlgmr.msra.gmra.mrb[0].mxu0 %vm337_vm0, %v1426_v11  ;;  %v498_v34 = vld [vmem:[%s2058_s4 + $0x38] sm:$0xff]  ;;  %v497_v35 = vld [vmem:[%s2058_s4 + $0x30] sm:$0xff]  ;;  %v648_v37 = vld [vmem:[#allocation8] sm:$0xff] }
  0xae   :  { %1323 = vmatprep.mubr.msk.bf16.mxu0 %vm337_vm0, %v1427_v12  ;;  %v649_v36 = vld [vmem:[#allocation8 + $0x8] sm:$0xff]  ;;  %v651_v38 = vld [vmem:[#allocation8 + $0x18] sm:$0xff]  ;;  %v650_v39 = vld [vmem:[#allocation8 + $0x10] sm:$0xff] }
  0xaf   :  { %v653_v40 = vld [vmem:[#allocation8 + $0x28] sm:$0xff]  ;;  %v652_v41 = vld [vmem:[#allocation8 + $0x20] sm:$0xff]  ;;  %v655_v42 = vld [vmem:[#allocation8 + $0x38] sm:$0xff] }
  0xb0   :  { %242 = vperm.xlu1 %1422, %v196_v13   ;;  %237 = vperm.xlu0 %1421, %v195_v14   ;;  %v654_v43 = vld [vmem:[#allocation8 + $0x30] sm:$0xff]  ;;  %v815_v44 = vld [vmem:[#allocation11 + $0x8] sm:$0xff]  ;;  %v814_v45 = vld [vmem:[#allocation11] sm:$0xff] }
  0xb1   :  { %v817_v46 = vld [vmem:[#allocation11 + $0x18] sm:$0xff]  ;;  %v816_v47 = vld [vmem:[#allocation11 + $0x10] sm:$0xff]  ;;  %v819_v48 = vld [vmem:[#allocation11 + $0x28] sm:$0xff] }
  0xb2   :  { %v818_v49 = vld [vmem:[#allocation11 + $0x20] sm:$0xff]  ;;  %v821_v50 = vld [vmem:[#allocation11 + $0x38] sm:$0xff]  ;;  %v820_v51 = vld [vmem:[#allocation11 + $0x30] sm:$0xff] }
  0xb3   :  { %v980_v52 = vld [vmem:[#allocation14 + $0x8] sm:$0xff]  ;;  %v979_v53 = vld [vmem:[#allocation14] sm:$0xff]  ;;  %v982_v54 = vld [vmem:[#allocation14 + $0x18] sm:$0xff] }
  0xb4   :  { %252 = vperm.xlu1 %1422, %v198_v15   ;;  %247 = vperm.xlu0 %1421, %v197_v16   ;;  %v981_v55 = vld [vmem:[#allocation14 + $0x10] sm:$0xff]  ;;  %v984_v56 = vld [vmem:[#allocation14 + $0x28] sm:$0xff]  ;;  %v983_v57 = vld [vmem:[#allocation14 + $0x20] sm:$0xff] }
  0xb5   :  { %1324 = vmatmul.mubr.msk.bf16.gmra.mrb[4].mxu0 %vm337_vm0, %v1428_v17  ;;  %v986_v58 = vld [vmem:[#allocation14 + $0x38] sm:$0xff]  ;;  %v985_v59 = vld [vmem:[#allocation14 + $0x30] sm:$0xff]  ;;  %v1133_v60 = vld [vmem:[#allocation16 + $0x8] sm:$0xff] }
  0xb6   :  { %1327 = vmatprep.mubr.msk.bf16.mxu0 %vm337_vm0, %v1429_v18  ;;  %v1132_v61 = vld [vmem:[#allocation16] sm:$0xff]  ;;  %v1135_v62 = vld [vmem:[#allocation16 + $0x18] sm:$0xff]  ;;  %v1134_v63 = vld [vmem:[#allocation16 + $0x10] sm:$0xff] }
  0xb7   :  { %v1137_v0 = vld [vmem:[#allocation16 + $0x28] sm:$0xff]  ;;  %v1136_v1 = vld [vmem:[#allocation16 + $0x20] sm:$0xff]  ;;  %v1139_v2 = vld [vmem:[#allocation16 + $0x38] sm:$0xff] }
  0xb8   :  { %262 = vperm.xlu1 %1422, %v200_v19   ;;  %257 = vperm.xlu0 %1421, %v199_v20   ;;  %v1138_v3 = vld [vmem:[#allocation16 + $0x30] sm:$0xff]  ;;  %v1201_v4 = vld [vmem:[#allocation2] sm:$0x1]  ;;  %v1433_v5 = vld [vmem:[#allocation5] sm:$0xff]  }
  0xb9   :  { %1351 = vmatprep.mubr.bf16.mxu1 %v1433_v5 }
  0xbc   :  { %272 = vperm.xlu1 %1422, %v202_v21   ;;  %267 = vperm.xlu0 %1421, %v201_v22  }
  0xbd   :  { %1328 = vmatmul.mubr.msk.bf16.gmra.mrb[8].mxu0 %vm337_vm0, %v1430_v23 }
  0xbe   :  { %1331 = vmatprep.mubr.msk.bf16.mxu0 %vm337_vm0, %v1431_v24 }
  0xc0   :  { %282 = vperm.xlu1 %1422, %v204_v25   ;;  %277 = vperm.xlu0 %1421, %v203_v26  }
  0xc4   :  { %506 = vperm.xlu1 %1422, %v492_v27   ;;  %501 = vperm.xlu0 %1421, %v491_v28  }
  0xc5   :  { %1332 = vmatmul.mubr.msk.bf16.gmra.mrb[12].mxu0 %vm337_vm0, %v1432_v29 }
  0xc8   :  { %516 = vperm.xlu1 %1422, %v494_v30   ;;  %511 = vperm.xlu0 %1421, %v493_v31  }
  0xcc   :  { %526 = vperm.xlu1 %1422, %v496_v32   ;;  %521 = vperm.xlu0 %1421, %v495_v33  }
  0xd0   :  { %536 = vperm.xlu1 %1422, %v498_v34   ;;  %531 = vperm.xlu0 %1421, %v497_v35  }
  0xd4   :  { %663 = vperm.xlu1 %1422, %v649_v36   ;;  %658 = vperm.xlu0 %1421, %v648_v37  }
  0xd8   :  { %673 = vperm.xlu1 %1422, %v651_v38   ;;  %668 = vperm.xlu0 %1421, %v650_v39  }
  0xdc   :  { %683 = vperm.xlu1 %1422, %v653_v40   ;;  %678 = vperm.xlu0 %1421, %v652_v41  }
  0xe0   :  { %693 = vperm.xlu1 %1422, %v655_v42   ;;  %688 = vperm.xlu0 %1421, %v654_v43  }
  0xe4   :  { %829 = vperm.xlu1 %1422, %v815_v44   ;;  %824 = vperm.xlu0 %1421, %v814_v45  }
  0xe8   :  { %839 = vperm.xlu1 %1422, %v817_v46   ;;  %834 = vperm.xlu0 %1421, %v816_v47  }
  0xec   :  { %849 = vperm.xlu1 %1422, %v819_v48   ;;  %844 = vperm.xlu0 %1421, %v818_v49  }
  0xf0   :  { %859 = vperm.xlu1 %1422, %v821_v50   ;;  %854 = vperm.xlu0 %1421, %v820_v51  }
  0xf4   :  { %994 = vperm.xlu1 %1422, %v980_v52   ;;  %989 = vperm.xlu0 %1421, %v979_v53  }
  0xf8   :  { %1004 = vperm.xlu1 %1422, %v982_v54   ;;  %999 = vperm.xlu0 %1421, %v981_v55  }
  0xfc   :  { %1014 = vperm.xlu1 %1422, %v984_v56   ;;  %1009 = vperm.xlu0 %1421, %v983_v57  }
 0x100   :  { %1024 = vperm.xlu1 %1422, %v986_v58   ;;  %1019 = vperm.xlu0 %1421, %v985_v59  }
 0x104   :  { %1147 = vperm.xlu1 %1422, %v1133_v60   ;;  %1142 = vperm.xlu0 %1421, %v1132_v61  }
 0x108   :  { %1157 = vperm.xlu1 %1422, %v1135_v62   ;;  %1152 = vperm.xlu0 %1421, %v1134_v63  }
 0x10c   :  { %1167 = vperm.xlu1 %1422, %v1137_v0   ;;  %1162 = vperm.xlu0 %1421, %v1136_v1  }
 0x110   :  { %1177 = vperm.xlu1 %1422, %v1139_v2   ;;  %1172 = vperm.xlu0 %1421, %v1138_v3  }
 0x114   :  { %1204 = vperm.xlu0 %1421, %v1201_v4  }
 0x123   :  { %v208_v6 = vpop.permute.xlu0 %207  ;;  %v218_v7 = vpop.permute.xlu1 %217 }
 0x127   :  { %v213_v8 = vpop.permute.xlu0 %212  ;;  %v223_v9 = vpop.permute.xlu1 %222 }
 0x12b   :  { %v228_v10 = vpop.permute.xlu0 %227  ;;  %v233_v11 = vpop.permute.xlu1 %232 }
 0x12f   :  { %v238_v12 = vpop.permute.xlu0 %237  ;;  %v243_v16 = vpop.permute.xlu1 %242 }
 0x133   :  { %v248_v22 = vpop.permute.xlu0 %247  ;;  %v253_v23 = vpop.permute.xlu1 %252 }
 0x137   :  { %v258_v29 = vpop.permute.xlu0 %257  ;;  %v263_v34 = vpop.permute.xlu1 %262 }
 0x13b   :  { %v268_v42 = vpop.permute.xlu0 %267  ;;  %v273_v48 = vpop.permute.xlu1 %272 }
 0x13f   :  { %v278_v53 = vpop.permute.xlu0 %277  ;;  %v283_v59 = vpop.permute.xlu1 %282 }
 0x180   :  { %v1321_v13 = vpop.f32.mrb[0].mxu0 }
 0x181   :  { %v405_v14 = vadd.f32 %v1321_v13, %v218_v7  ;;  %v396_v15 = vpop.f32.mrb[1].mxu0 }
 0x182   :  { %v397_v17 = vadd.f32 %v396_v15, %v208_v6  ;;  %v1322_v18 = vpop.f32.mrb[2].mxu0  ;;  %v1435_v15 = vld [vmem:[#allocation5 + $0x10] sm:$0xff]  }
 0x183   :  { %1449 = vtanh.f32 %v405_v14  ;;  %v408_v19 = vadd.f32 %v1322_v18, %v223_v9  ;;  %v399_v20 = vpop.f32.mrb[3].mxu0  ;;  %v1434_v14 = vld [vmem:[#allocation5 + $0x8] sm:$0xff]   ;;  %v502_v18 = vpop.permute.xlu0 %501 }
 0x184   :  { %1451 = vtanh.f32 %v397_v17  ;;  %v400_v21 = vadd.f32 %v399_v20, %v213_v8  ;;  %v1437_v17 = vld [vmem:[#allocation7] sm:$0xff]  }
 0x185   :  { %1453 = vtanh.f32 %v408_v19  ;;  %1367 = vmatprep.mubr.msk.bf16.mxu0 %vm716_vm1, %v1437_v17  ;;  %v507_v19 = vpop.permute.xlu1 %506 }
 0x186   :  { %1455 = vtanh.f32 %v400_v21 }
 0x187   :  { %v512_v20 = vpop.permute.xlu0 %511 }
 0x188   :  { %v1325_v24 = vpop.f32.mrb[4].mxu0 }
 0x189   :  { %v421_v25 = vadd.f32 %v1325_v24, %v238_v12  ;;  %v412_v26 = vpop.f32.mrb[5].mxu0  ;;  %v517_v21 = vpop.permute.xlu1 %516 }
 0x18a   :  { %v413_v27 = vadd.f32 %v412_v26, %v228_v10  ;;  %v1326_v28 = vpop.f32.mrb[6].mxu0 }
 0x18b   :  { %1457 = vtanh.f32 %v421_v25  ;;  %v424_v30 = vadd.f32 %v1326_v28, %v243_v16  ;;  %v415_v31 = vpop.f32.mrb[7].mxu0  ;;  %v1436_v16 = vld [vmem:[#allocation5 + $0x18] sm:$0xff]   ;;  %v522_v25 = vpop.permute.xlu0 %521 }
 0x18c   :  { %1459 = vtanh.f32 %v413_v27  ;;  %v416_v32 = vadd.f32 %v415_v31, %v233_v11 }
 0x18d   :  { %v1450_v33 = vpop.eup %1449  ;;  %1461 = vtanh.f32 %v424_v30  ;;  %v527_v30 = vpop.permute.xlu1 %526 }
 0x18e   :  { %v1452_v35 = vpop.eup %1451  ;;  %1463 = vtanh.f32 %v416_v32 }
 0x18f   :  { %v1454_v36 = vpop.eup %1453  ;;  %v532_v32 = vpop.permute.xlu0 %531 }
 0x190   :  { %v1329_v37 = vpop.f32.mrb[8].mxu0  ;;  %v1456_v38 = vpop.eup %1455  ;;  %v476_v41 = vpack.c.bf16 %v1454_v36, %v1450_v33 }
 0x191   :  { %v437_v39 = vadd.f32 %v1329_v37, %v258_v29  ;;  %v428_v40 = vpop.f32.mrb[9].mxu0  ;;  %v475_v45 = vpack.c.bf16 %v1456_v38, %v1452_v35  ;;  %v537_v36 = vpop.permute.xlu1 %536 }
 0x192   :  { %v429_v43 = vadd.f32 %v428_v40, %v248_v22  ;;  %v1330_v44 = vpop.f32.mrb[10].mxu0 }
 0x193   :  { %1465 = vtanh.f32 %v437_v39  ;;  %v440_v46 = vadd.f32 %v1330_v44, %v263_v34  ;;  %v431_v47 = vpop.f32.mrb[11].mxu0  ;;  %1335 = vmatprep.subr.bf16.mxu1 %v475_v45 }
 0x194   :  { %1467 = vtanh.f32 %v429_v43  ;;  %v432_v49 = vadd.f32 %v431_v47, %v253_v23  ;;  %1336 = vmatpush3.bf16.msra.mxu1 %v475_v45 }
 0x195   :  { %1469 = vtanh.f32 %v440_v46  ;;  %v1458_v50 = vpop.eup %1457  ;;  %1337 = vmatprep.subr.bf16.mxu1 %v476_v41 }
 0x196   :  { %1471 = vtanh.f32 %v432_v49  ;;  %v1460_v51 = vpop.eup %1459 }
 0x197   :  { %v1462_v52 = vpop.eup %1461 }
 0x198   :  { %v1333_v54 = vpop.f32.mrb[12].mxu0  ;;  %v1464_v55 = vpop.eup %1463  ;;  %1338 = vmatpush3.bf16.msra.mxu1 %v476_v41  ;;  %v478_v58 = vpack.c.bf16 %v1462_v52, %v1458_v50 }
 0x199   :  { %v453_v56 = vadd.f32 %v1333_v54, %v278_v53  ;;  %v444_v57 = vpop.f32.mrb[13].mxu0  ;;  %v477_v62 = vpack.c.bf16 %v1464_v55, %v1460_v51  ;;  %v1438_v54 = vld [vmem:[#allocation7 + $0x8] sm:$0xff]   ;;  %v1439_v55 = vld [vmem:[#allocation7 + $0x10] sm:$0xff]  }
 0x19a   :  { %v445_v60 = vadd.f32 %v444_v57, %v268_v42  ;;  %v1334_v61 = vpop.f32.mrb[14].mxu0  ;;  %v1441_v57 = vld [vmem:[#allocation10] sm:$0xff]  }
 0x19b   :  { %1473 = vtanh.f32 %v453_v56  ;;  %v456_v63 = vadd.f32 %v1334_v61, %v283_v59  ;;  %v447_v0 = vpop.f32.mrb[15].mxu0  ;;  %1339 = vmatprep.subr.bf16.mxu1 %v477_v62  ;;  %v1440_v56 = vld [vmem:[#allocation7 + $0x18] sm:$0xff]   ;;  %v664_v59 = vpop.permute.xlu1 %663 }
 0x19c   :  { %1475 = vtanh.f32 %v445_v60  ;;  %v448_v1 = vadd.f32 %v447_v0, %v273_v48  ;;  %1340 = vmatpush3.bf16.msra.mxu1 %v477_v62 }
 0x19d   :  { %v1466_v2 = vpop.eup %1465  ;;  %1477 = vtanh.f32 %v456_v63  ;;  %1341 = vmatprep.subr.bf16.mxu1 %v478_v58 }
 0x19e   :  { %v1468_v3 = vpop.eup %1467  ;;  %1479 = vtanh.f32 %v448_v1 }
 0x19f   :  { %v1470_v4 = vpop.eup %1469  ;;  %v674_v61 = vpop.permute.xlu1 %673 }
 0x1a0   :  { %v1472_v5 = vpop.eup %1471  ;;  %v480_v6 = vpack.c.bf16 %v1470_v4, %v1466_v2  ;;  %1342 = vmatpush3.bf16.msra.mxu1 %v478_v58  ;;  %v659_v58 = vpop.permute.xlu0 %658 }
 0x1a1   :  { %v479_v7 = vpack.c.bf16 %v1472_v5, %v1468_v3 }
 0x1a3   :  { %1343 = vmatprep.subr.bf16.mxu1 %v479_v7 }
 0x1a4   :  { %1344 = vmatpush3.bf16.msra.mxu1 %v479_v7  ;;  %v669_v60 = vpop.permute.xlu0 %668 }
 0x1a5   :  { %v1474_v8 = vpop.eup %1473  ;;  %1345 = vmatprep.subr.bf16.mxu1 %v480_v6 }
 0x1a6   :  { %v1476_v9 = vpop.eup %1475 }
 0x1a7   :  { %v1478_v10 = vpop.eup %1477 }
 0x1a8   :  { %v1480_v11 = vpop.eup %1479  ;;  %v482_v12 = vpack.c.bf16 %v1478_v10, %v1474_v8  ;;  %1346 = vmatpush3.bf16.msra.mxu1 %v480_v6  ;;  %v679_v1 = vpop.permute.xlu0 %678 }
 0x1a9   :  { %v481_v13 = vpack.c.bf16 %v1480_v11, %v1476_v9  ;;  %v684_v6 = vpop.permute.xlu1 %683 }
 0x1ab   :  { %1347 = vmatprep.subr.bf16.mxu1 %v481_v13 }
 0x1ac   :  { %1348 = vmatpush3.bf16.msra.mxu1 %v481_v13  ;;  %v689_v8 = vpop.permute.xlu0 %688 }
 0x1ad   :  { %1349 = vmatprep.subr.bf16.mxu1 %v482_v12 }
 0x1b0   :  { %1350 = vmatpush3.bf16.msra.mxu1 %v482_v12  ;;  %v694_v12 = vpop.permute.xlu1 %693 }
 0x1b3   :  { %1352 = vmatmul.mubr.bf16.vlgmr.msra.gmra.mrb[0].mxu1 %v1434_v14 }
 0x1b4   :  { %1355 = vmatprep.mubr.bf16.mxu1 %v1435_v15 }
 0x1bb   :  { %1356 = vmatmul.mubr.bf16.gmra.mrb[4].mxu1 %v1436_v16 }
 0x1bc   :  { %1383 = vmatprep.mubr.msk.bf16.mxu1 %vm716_vm1, %v1441_v57 }
 0x286   :  { %v1353_v22 = vpop.f32.mrb[0].mxu1 }
 0x287   :  { %v606_v23 = vadd.f32 %v1353_v22, %v512_v20  ;;  %v597_v24 = vpop.f32.mrb[1].mxu1 }
 0x288   :  { %v598_v26 = vadd.f32 %v597_v24, %v502_v18  ;;  %v1354_v27 = vpop.f32.mrb[2].mxu1 }
 0x289   :  { %1481 = vtanh.f32 %v606_v23  ;;  %v609_v28 = vadd.f32 %v1354_v27, %v517_v21  ;;  %v600_v29 = vpop.f32.mrb[3].mxu1 }
 0x28a   :  { %1483 = vtanh.f32 %v598_v26  ;;  %v601_v31 = vadd.f32 %v600_v29, %v507_v19 }
 0x28b   :  { %1485 = vtanh.f32 %v609_v28 }
 0x28c   :  { %1487 = vtanh.f32 %v601_v31  ;;  %v1443_v31 = vld [vmem:[#allocation10 + $0x10] sm:$0xff]  }
 0x28e   :  { %v1357_v33 = vpop.f32.mrb[4].mxu1 }
 0x28f   :  { %v622_v34 = vadd.f32 %v1357_v33, %v532_v32  ;;  %v613_v35 = vpop.f32.mrb[5].mxu1  ;;  %v1444_v32 = vld [vmem:[#allocation10 + $0x18] sm:$0xff]   ;;  %v1445_v33 = vld [vmem:[#allocation13] sm:$0xff]  }
 0x290   :  { %v614_v37 = vadd.f32 %v613_v35, %v522_v25  ;;  %v1358_v38 = vpop.f32.mrb[6].mxu1  ;;  %v830_v35 = vpop.permute.xlu1 %829 }
 0x291   :  { %1489 = vtanh.f32 %v622_v34  ;;  %v625_v39 = vadd.f32 %v1358_v38, %v537_v36  ;;  %v616_v40 = vpop.f32.mrb[7].mxu1  ;;  %v825_v34 = vpop.permute.xlu0 %824 }
 0x292   :  { %1491 = vtanh.f32 %v614_v37  ;;  %v617_v41 = vadd.f32 %v616_v40, %v527_v30  ;;  %v1442_v30 = vld [vmem:[#allocation10 + $0x8] sm:$0xff]  }
 0x293   :  { %v1482_v42 = vpop.eup %1481  ;;  %1493 = vtanh.f32 %v625_v39 }
 0x294   :  { %v1484_v43 = vpop.eup %1483  ;;  %1495 = vtanh.f32 %v617_v41  ;;  %v840_v37 = vpop.permute.xlu1 %839 }
 0x295   :  { %v1486_v44 = vpop.eup %1485  ;;  %v835_v36 = vpop.permute.xlu0 %834 }
 0x296   :  { %v1488_v45 = vpop.eup %1487  ;;  %v637_v46 = vpack.c.bf16 %v1486_v44, %v1482_v42 }
 0x297   :  { %v636_v47 = vpack.c.bf16 %v1488_v45, %v1484_v43 }
 0x299   :  { %1359 = vmatprep.subr.bf16.mxu0 %v636_v47  ;;  %v845_v41 = vpop.permute.xlu0 %844 }
 0x29a   :  { %1360 = vmatpush3.bf16.msra.mxu0 %v636_v47 }
 0x29b   :  { %v1490_v48 = vpop.eup %1489  ;;  %1361 = vmatprep.subr.bf16.mxu0 %v637_v46 }
 0x29c   :  { %v1492_v49 = vpop.eup %1491 }
 0x29d   :  { %v1494_v50 = vpop.eup %1493 }
 0x29e   :  { %v1496_v51 = vpop.eup %1495  ;;  %1362 = vmatpush3.bf16.msra.mxu0 %v637_v46  ;;  %v639_v52 = vpack.c.bf16 %v1494_v50, %v1490_v48  ;;  %v850_v46 = vpop.permute.xlu1 %849 }
 0x29f   :  { %v638_v53 = vpack.c.bf16 %v1496_v51, %v1492_v49  ;;  %v855_v48 = vpop.permute.xlu0 %854 }
 0x2a1   :  { %1363 = vmatprep.subr.bf16.mxu0 %v638_v53 }
 0x2a2   :  { %1364 = vmatpush3.bf16.msra.mxu0 %v638_v53 }
 0x2a3   :  { %1365 = vmatprep.subr.bf16.mxu0 %v639_v52 }
 0x2a6   :  { %1366 = vmatpush3.bf16.msra.mxu0 %v639_v52  ;;  %v860_v52 = vpop.permute.xlu1 %859 }
 0x2a9   :  { %1368 = vmatmul.mubr.msk.bf16.vlgmr.msra.gmra.mrb[16].mxu0 %vm716_vm1, %v1438_v54 }
 0x2aa   :  { %1371 = vmatprep.mubr.msk.bf16.mxu0 %vm716_vm1, %v1439_v55 }
 0x2b1   :  { %1372 = vmatmul.mubr.msk.bf16.gmra.mrb[20].mxu0 %vm716_vm1, %v1440_v56 }
 0x2b2   :  { %1399 = vmatprep.mubr.msk.bf16.mxu0 %vm716_vm1, %v1445_v33 }
 0x37c   :  { %v1369_v62 = vpop.f32.mrb[16].mxu0 }
 0x37d   :  { %v772_v63 = vadd.f32 %v1369_v62, %v669_v60  ;;  %v763_v0 = vpop.f32.mrb[17].mxu0 }
 0x37e   :  { %v764_v2 = vadd.f32 %v763_v0, %v659_v58  ;;  %v1370_v3 = vpop.f32.mrb[18].mxu0 }
 0x37f   :  { %1497 = vtanh.f32 %v772_v63  ;;  %v775_v4 = vadd.f32 %v1370_v3, %v674_v61  ;;  %v766_v5 = vpop.f32.mrb[19].mxu0 }
 0x380   :  { %1499 = vtanh.f32 %v764_v2  ;;  %v767_v7 = vadd.f32 %v766_v5, %v664_v59 }
 0x381   :  { %1501 = vtanh.f32 %v775_v4 }
 0x382   :  { %1503 = vtanh.f32 %v767_v7  ;;  %v1447_v7 = vld [vmem:[#allocation13 + $0x10] sm:$0xff]  }
 0x384   :  { %v1373_v9 = vpop.f32.mrb[20].mxu0 }
 0x385   :  { %v788_v10 = vadd.f32 %v1373_v9, %v689_v8  ;;  %v779_v11 = vpop.f32.mrb[21].mxu0  ;;  %v1448_v8 = vld [vmem:[#allocation13 + $0x18] sm:$0xff]   ;;  %v990_v9 = vpop.permute.xlu0 %989 }
 0x386   :  { %v780_v13 = vadd.f32 %v779_v11, %v679_v1  ;;  %v1374_v14 = vpop.f32.mrb[22].mxu0 }
 0x387   :  { %1505 = vtanh.f32 %v788_v10  ;;  %v791_v15 = vadd.f32 %v1374_v14, %v694_v12  ;;  %v782_v16 = vpop.f32.mrb[23].mxu0  ;;  %v995_v10 = vpop.permute.xlu1 %994 }
 0x388   :  { %1507 = vtanh.f32 %v780_v13  ;;  %v783_v17 = vadd.f32 %v782_v16, %v684_v6  ;;  %v1446_v6 = vld [vmem:[#allocation13 + $0x8] sm:$0xff]  }
 0x389   :  { %v1498_v18 = vpop.eup %1497  ;;  %1509 = vtanh.f32 %v791_v15  ;;  %v1000_v11 = vpop.permute.xlu0 %999 }
 0x38a   :  { %v1500_v19 = vpop.eup %1499  ;;  %1511 = vtanh.f32 %v783_v17 }
 0x38b   :  { %v1502_v20 = vpop.eup %1501  ;;  %v1005_v12 = vpop.permute.xlu1 %1004 }
 0x38c   :  { %v1504_v21 = vpop.eup %1503  ;;  %v803_v22 = vpack.c.bf16 %v1502_v20, %v1498_v18 }
 0x38d   :  { %v802_v23 = vpack.c.bf16 %v1504_v21, %v1500_v19  ;;  %v1010_v13 = vpop.permute.xlu0 %1009 }
 0x38f   :  { %1375 = vmatprep.subr.bf16.mxu1 %v802_v23  ;;  %v1015_v14 = vpop.permute.xlu1 %1014 }
 0x390   :  { %1376 = vmatpush3.bf16.msra.mxu1 %v802_v23 }
 0x391   :  { %v1506_v24 = vpop.eup %1505  ;;  %1377 = vmatprep.subr.bf16.mxu1 %v803_v22  ;;  %v1020_v18 = vpop.permute.xlu0 %1019 }
 0x392   :  { %v1508_v25 = vpop.eup %1507 }
 0x393   :  { %v1510_v26 = vpop.eup %1509 }
 0x394   :  { %v1512_v27 = vpop.eup %1511  ;;  %1378 = vmatpush3.bf16.msra.mxu1 %v803_v22  ;;  %v805_v28 = vpack.c.bf16 %v1510_v26, %v1506_v24  ;;  %v1025_v22 = vpop.permute.xlu1 %1024 }
 0x395   :  { %v804_v29 = vpack.c.bf16 %v1512_v27, %v1508_v25  ;;  %v1143_v25 = vpop.permute.xlu0 %1142 }
 0x397   :  { %1379 = vmatprep.subr.bf16.mxu1 %v804_v29 }
 0x398   :  { %1380 = vmatpush3.bf16.msra.mxu1 %v804_v29  ;;  %v1148_v29 = vpop.permute.xlu1 %1147 }
 0x399   :  { %1381 = vmatprep.subr.bf16.mxu1 %v805_v28 }
 0x39c   :  { %1382 = vmatpush3.bf16.msra.mxu1 %v805_v28 }
 0x39f   :  { %1384 = vmatmul.mubr.msk.bf16.vlgmr.msra.gmra.mrb[8].mxu1 %vm716_vm1, %v1442_v30 }
 0x3a0   :  { %1387 = vmatprep.mubr.msk.bf16.mxu1 %vm716_vm1, %v1443_v31 }
 0x3a7   :  { %1388 = vmatmul.mubr.msk.bf16.gmra.mrb[12].mxu1 %vm716_vm1, %v1444_v32 }
 0x472   :  { %v1385_v38 = vpop.f32.mrb[8].mxu1 }
 0x473   :  { %v937_v39 = vadd.f32 %v1385_v38, %v835_v36  ;;  %v928_v40 = vpop.f32.mrb[9].mxu1  ;;  %v1153_v36 = vpop.permute.xlu0 %1152 }
 0x474   :  { %v929_v42 = vadd.f32 %v928_v40, %v825_v34  ;;  %v1386_v43 = vpop.f32.mrb[10].mxu1 }
 0x475   :  { %1513 = vtanh.f32 %v937_v39  ;;  %v940_v44 = vadd.f32 %v1386_v43, %v840_v37  ;;  %v931_v45 = vpop.f32.mrb[11].mxu1  ;;  %v1158_v39 = vpop.permute.xlu1 %1157 }
 0x476   :  { %1515 = vtanh.f32 %v929_v42  ;;  %v932_v47 = vadd.f32 %v931_v45, %v830_v35 }
 0x477   :  { %1517 = vtanh.f32 %v940_v44  ;;  %v1163_v45 = vpop.permute.xlu0 %1162 }
 0x478   :  { %1519 = vtanh.f32 %v932_v47 }
 0x47a   :  { %v1389_v49 = vpop.f32.mrb[12].mxu1 }
 0x47b   :  { %v953_v50 = vadd.f32 %v1389_v49, %v855_v48  ;;  %v944_v51 = vpop.f32.mrb[13].mxu1  ;;  %v1168_v49 = vpop.permute.xlu1 %1167 }
 0x47c   :  { %v945_v53 = vadd.f32 %v944_v51, %v845_v41  ;;  %v1390_v54 = vpop.f32.mrb[14].mxu1 }
 0x47d   :  { %1521 = vtanh.f32 %v953_v50  ;;  %v956_v55 = vadd.f32 %v1390_v54, %v860_v52  ;;  %v947_v56 = vpop.f32.mrb[15].mxu1 }
 0x47e   :  { %1523 = vtanh.f32 %v945_v53  ;;  %v948_v57 = vadd.f32 %v947_v56, %v850_v46 }
 0x47f   :  { %v1514_v58 = vpop.eup %1513  ;;  %1525 = vtanh.f32 %v956_v55 }
 0x480   :  { %v1516_v59 = vpop.eup %1515  ;;  %1527 = vtanh.f32 %v948_v57  ;;  %v1173_v57 = vpop.permute.xlu0 %1172 }
 0x481   :  { %v1518_v60 = vpop.eup %1517 }
 0x482   :  { %v1520_v61 = vpop.eup %1519  ;;  %v968_v62 = vpack.c.bf16 %v1518_v60, %v1514_v58  ;;  %v1178_v60 = vpop.permute.xlu1 %1177 }
 0x483   :  { %v967_v63 = vpack.c.bf16 %v1520_v61, %v1516_v59 }
 0x485   :  { %1391 = vmatprep.subr.bf16.mxu0 %v967_v63 }
 0x486   :  { %1392 = vmatpush3.bf16.msra.mxu0 %v967_v63  ;;  %v1207_v63 = vlaneseq }
 0x487   :  { %v1522_v0 = vpop.eup %1521  ;;  %1393 = vmatprep.subr.bf16.mxu0 %v968_v62 }
 0x488   :  { %v1524_v1 = vpop.eup %1523 }
 0x489   :  { %v1526_v2 = vpop.eup %1525 }
 0x48a   :  { %v1528_v3 = vpop.eup %1527  ;;  %1394 = vmatpush3.bf16.msra.mxu0 %v968_v62  ;;  %v970_v4 = vpack.c.bf16 %v1526_v2, %v1522_v0  ;;  %v1208_v2 = vshrl.u32 %v1207_v63, 7 }
 0x48b   :  { %v969_v5 = vpack.c.bf16 %v1528_v3, %v1524_v1 }
 0x48d   :  { %1395 = vmatprep.subr.bf16.mxu0 %v969_v5 }
 0x48e   :  { %1396 = vmatpush3.bf16.msra.mxu0 %v969_v5  ;;  %v1209_v5 = vsub.s32 0, %v1208_v2 }
 0x48f   :  { %1397 = vmatprep.subr.bf16.mxu0 %v970_v4 }
 0x492   :  { %1398 = vmatpush3.bf16.msra.mxu0 %v970_v4 }
 0x495   :  { %1400 = vmatmul.mubr.msk.bf16.vlgmr.msra.gmra.mrb[24].mxu0 %vm716_vm1, %v1446_v6 }
 0x496   :  { %1403 = vmatprep.mubr.msk.bf16.mxu0 %vm716_vm1, %v1447_v7  ;;  %v1205_v7 = vpop.permute.xlu0 %1204 }
 0x49d   :  { %1404 = vmatmul.mubr.msk.bf16.gmra.mrb[28].mxu0 %vm716_vm1, %v1448_v8 }
 0x568   :  { %v1401_v15 = vpop.f32.mrb[24].mxu0 }
 0x569   :  { %v1102_v16 = vadd.f32 %v1401_v15, %v1000_v11  ;;  %v1093_v17 = vpop.f32.mrb[25].mxu0 }
 0x56a   :  { %v1094_v19 = vadd.f32 %v1093_v17, %v990_v9  ;;  %v1402_v20 = vpop.f32.mrb[26].mxu0  ;;  %v1210_v9 = vrot.slane %v1205_v7, %v1209_v5 }
 0x56b   :  { %v1096_v21 = vpop.f32.mrb[27].mxu0  ;;  %v1105_v23 = vadd.f32 %v1402_v20, %v1005_v12 }
 0x56c   :  { %1529 = vtanh.f32 %v1094_v19  ;;  %v1097_v24 = vadd.f32 %v1096_v21, %v995_v10 }
 0x56d   :  { %1531 = vtanh.f32 %v1102_v16 }
 0x56e   :  { %1533 = vtanh.f32 %v1097_v24 }
 0x56f   :  { %1535 = vtanh.f32 %v1105_v23 }
 0x570   :  { %v1405_v26 = vpop.f32.mrb[28].mxu0 }
 0x571   :  { %v1118_v27 = vadd.f32 %v1405_v26, %v1020_v18  ;;  %v1109_v28 = vpop.f32.mrb[29].mxu0 }
 0x572   :  { %v1110_v30 = vadd.f32 %v1109_v28, %v1010_v13  ;;  %v1406_v31 = vpop.f32.mrb[30].mxu0 }
 0x573   :  { %v1112_v32 = vpop.f32.mrb[31].mxu0  ;;  %v1121_v33 = vadd.f32 %v1406_v31, %v1025_v22 }
 0x574   :  { %1537 = vtanh.f32 %v1110_v30  ;;  %v1113_v34 = vadd.f32 %v1112_v32, %v1015_v14 }
 0x575   :  { %1539 = vtanh.f32 %v1118_v27 }
 0x576   :  { %v1530_v35 = vpop.eup %1529  ;;  %1541 = vtanh.f32 %v1113_v34 }
 0x577   :  { %v1532_v37 = vpop.eup %1531  ;;  %1543 = vtanh.f32 %v1121_v33  ;;  %v1180_v40 = vmul.f32 %v1530_v35, %v1143_v25 }
 0x578   :  { %v1534_v38 = vpop.eup %1533  ;;  %v1182_v43 = vmul.f32 %v1532_v37, %v1153_v36 }
 0x579   :  { %v1181_v41 = vmul.f32 %v1534_v38, %v1148_v29  ;;  %v1536_v42 = vpop.eup %1535 }
 0x57a   :  { %v1183_v46 = vmul.f32 %v1536_v42, %v1158_v39 }
 0x57b   :  { %v1188_v44 = vadd.f32 %v1181_v41, %v1180_v40 }
 0x57d   :  { %v1189_v47 = vadd.f32 %v1188_v44, %v1182_v43 }
 0x57e   :  { %v1538_v48 = vpop.eup %1537 }
 0x57f   :  { %v1540_v50 = vpop.eup %1539  ;;  %v1184_v51 = vmul.f32 %v1538_v48, %v1163_v45  ;;  %v1190_v52 = vadd.f32 %v1189_v47, %v1183_v46 }
 0x580   :  { %v1542_v53 = vpop.eup %1541  ;;  %v1186_v58 = vmul.f32 %v1540_v50, %v1173_v57 }
 0x581   :  { %v1191_v54 = vadd.f32 %v1190_v52, %v1184_v51  ;;  %v1185_v55 = vmul.f32 %v1542_v53, %v1168_v49  ;;  %v1544_v56 = vpop.eup %1543 }
 0x582   :  { %v1187_v61 = vmul.f32 %v1544_v56, %v1178_v60 }
 0x583   :  { %v1192_v59 = vadd.f32 %v1191_v54, %v1185_v55 }
 0x585   :  { %v1193_v62 = vadd.f32 %v1192_v59, %v1186_v58 }
 0x587   :  { %v1194_v0 = vadd.f32 %v1193_v62, %v1187_v61 }
 0x589   :  { %v1195_v1 = vrot.slane %v1194_v0, 4 }
 0x58b   :  { %v1196_v3 = vadd.f32 %v1195_v1, %v1194_v0 }
 0x58d   :  { %v1197_v4 = vrot.slane %v1196_v3, 2 }
 0x58f   :  { %v1198_v6 = vadd.f32 %v1197_v4, %v1196_v3 }
 0x591   :  { %v1199_v8 = vrot.slane %v1198_v6, 1 }
 0x593   :  { %v1200_v10 = vadd.f32 %v1199_v8, %v1198_v6 }
 0x595   :  { %v1211_v11 = vadd.f32 %v1210_v9, %v1200_v10 }
 0x597   :  { %1545 = vtanh.f32 %v1211_v11 }
 0x5a1   :  { %v1546_v12 = vpop.eup %1545 }
 0x5a2   :  { %1213 = vst [vmem:[%s2067_s13] sm:$0x1] %v1546_v12 }
 0x5a3   :  { %1218 = vsyncpa [#allocation4], 1 }
 0x5a4   :  { %1219 = vsyncpa [#allocation6], 1 }
 0x5a5   :  { %1220 = vsyncpa [#allocation9], 1 }
 0x5a6   :  { %1221 = vsyncpa [#allocation12], 1 }
 0x5a7   :  { %1222 = vsyncpa [#allocation15], 1 }

</bundles_post_ra>
